<compile_context>
chip_gen: v7x
topology: tpu7x:2x2x1
jax: 0.10.0
libtpu: 0.0.40
codegen_flags: <defaults>
</compile_context>

<pallas_src>
import functools
import math

import jax
import jax.numpy as jnp
from jax.experimental import pallas as pl
from jax.experimental.pallas import tpu as pltpu


_MAX_LANE_TILE = 4096                        # lane-axis tile cap (mult of 128)
_TARGET_INPUT_TILE_BYTES = 8 * 1024 * 1024   # per input buffer (double-buffered)
_MAX_ACC_TILE_BYTES = 2 * 1024 * 1024        # cap for the (b, h) acc/out tiles
_MIN_PALLAS_ELEMS = 256 * 1024               # below this, jnp.mean wins


def _cdiv(a, b):
    return -(-a // b)


def _round_up(v, m):
    return _cdiv(v, m) * m


def _vmem_limit_bytes(in_tile, out_tile, acc_tile):
    # 2x input (double-buffered) + 2x output + accumulator scratch, with
    # generous headroom for f32 upcast temporaries / compiler internals.
    needed = 2 * in_tile + 2 * out_tile + acc_tile
    return int(min(max(2 * needed + (8 << 20), 32 << 20), 64 << 20))


# --------------------------------------------------------------------------
# Kernel 1: reduce over the SUBLANE axis of a (B, S, H) block (dim != last).
# --------------------------------------------------------------------------
def _avg_pool_kernel(x_ref, o_ref, acc_ref, *, inv_n, s_size, s_block, mask_s):
    s_idx = pl.program_id(2)
    last = pl.num_programs(2) - 1

    @pl.when(s_idx == 0)
    def _init():
        acc_ref[...] = jnp.zeros_like(acc_ref)

    if mask_s:
        # Steady state: plain load + add (no masking ops).
        @pl.when(s_idx != last)
        def _full():
            acc_ref[...] += jnp.sum(x_ref[...].astype(jnp.float32), axis=1)

        # Final (partial) reduce tile: zero the padded sublane rows.
        @pl.when(s_idx == last)
        def _partial():
            x = x_ref[...].astype(jnp.float32)
            row = jax.lax.broadcasted_iota(jnp.int32, x.shape, 1) + s_idx * s_block
            x = jnp.where(row < s_size, x, 0.0)
            acc_ref[...] += jnp.sum(x, axis=1)
    else:
        acc_ref[...] += jnp.sum(x_ref[...].astype(jnp.float32), axis=1)

    @pl.when(s_idx == last)
    def _finalize():
        o_ref[...] = (acc_ref[...] * inv_n).astype(o_ref.dtype)


def _pick_tiles_3d(bflat, s_size, h_size, itemsize):
    """Choose (b_t, s_t, h_t) for the sublane-reduce kernel."""
    # Lane (hidden) tile: prefer the full hidden dim (contiguous DMA rows).
    h_t = h_size if h_size <= _MAX_LANE_TILE else _MAX_LANE_TILE
    row_bytes = h_t * itemsize
    rows = max(64, _TARGET_INPUT_TILE_BYTES // row_bytes)   # b*s rows in budget

    # Reduce tile: full S if it still leaves >= 8 batch rows, else mult of 8.
    if s_size * 8 <= rows:
        s_t = s_size
        b_rows = rows // s_size
    else:
        s_t = max(8, (rows // 8) // 8 * 8)
        b_rows = 8

    # Cap batch tile so the lane-padded f32 accumulator/output tiles stay small
    # even for very narrow hidden dims.
    h_pad = _round_up(h_t, 128)
    b_cap = max(8, (_MAX_ACC_TILE_BYTES // (h_pad * 4)) // 8 * 8)
    b_rows = min(b_rows, b_cap)

    # Batch tile: multiple of 8 (unmasked output stores) or the full dim.
    if bflat <= 8 or bflat <= b_rows:
        b_t = bflat
    else:
        b_t = max(8, (b_rows // 8) * 8)

    # v7x has two TensorCores: the "parallel" axes must expose >= 2 blocks.
    if _cdiv(bflat, b_t) * _cdiv(h_size, h_t) < 2:
        if bflat > 8:
            b_t = min(b_t, _round_up(_cdiv(bflat, 2), 8))
        elif h_size > 128:
            h_t = min(h_t, _round_up(_cdiv(h_size, 2), 128))
    return b_t, s_t, h_t


def _avg_pool_3d(x3, *, block_b=None, block_s=None, block_h=None):
    """Mean over axis 1 of a (B, S, H) array via a tiled Pallas kernel."""
    bflat, s_size, h_size = x3.shape
    itemsize = jnp.dtype(x3.dtype).itemsize

    auto_b, auto_s, auto_h = _pick_tiles_3d(bflat, s_size, h_size, itemsize)
    b_t = block_b if block_b is not None else auto_b
    s_t = block_s if block_s is not None else auto_s
    h_t = block_h if block_h is not None else auto_h

    grid = (_cdiv(bflat, b_t), _cdiv(h_size, h_t), _cdiv(s_size, s_t))
    mask_s = (s_size % s_t) != 0

    kernel = functools.partial(
        _avg_pool_kernel,
        inv_n=1.0 / s_size, s_size=s_size, s_block=s_t, mask_s=mask_s)

    h_pad = _round_up(h_t, 128)
    in_tile = b_t * s_t * h_t * itemsize
    out_tile = b_t * h_pad * itemsize
    acc_tile = b_t * h_pad * 4
    total_bytes = x3.size * itemsize + bflat * h_size * itemsize

    # TODO(synk): fold batch rows into the lane axis when H < 128 so stores are
    # lane-dense; and sweep pipeline_mode=pl.Buffered(3) if DMA is exposed.
    return pl.pallas_call(
        kernel,
        out_shape=jax.ShapeDtypeStruct((bflat, h_size), x3.dtype),
        grid_spec=pltpu.PrefetchScalarGridSpec(
            num_scalar_prefetch=0,
            grid=grid,
            in_specs=[pl.BlockSpec((b_t, s_t, h_t), lambda b, h, s: (b, s, h))],
            out_specs=pl.BlockSpec((b_t, h_t), lambda b, h, s: (b, h)),
            scratch_shapes=[pltpu.VMEM((b_t, h_t), jnp.float32)],
        ),
        compiler_params=pltpu.CompilerParams(
            dimension_semantics=("parallel", "parallel", "arbitrary"),
            vmem_limit_bytes=_vmem_limit_bytes(in_tile, out_tile, acc_tile)),
        cost_estimate=pl.CostEstimate(
            flops=x3.size, transcendentals=0, bytes_accessed=total_bytes),
    )(x3)


# --------------------------------------------------------------------------
# Kernel 2: reduce over the LANE (last) axis of a (B, N) block (dim == last).
# Avoids the wrapper-side transpose (which cost a full extra HBM pass).
# --------------------------------------------------------------------------
def _avg_pool_last_kernel(x_ref, o_ref, acc_ref, *, inv_n, n_size, n_block,
                          mask_n):
    n_idx = pl.program_id(1)
    last = pl.num_programs(1) - 1

    @pl.when(n_idx == 0)
    def _init():
        acc_ref[...] = jnp.zeros_like(acc_ref)

    if mask_n:
        @pl.when(n_idx != last)
        def _full():
            acc_ref[...] += jnp.sum(x_ref[...].astype(jnp.float32), axis=-1,
                                    keepdims=True)

        @pl.when(n_idx == last)
        def _partial():
            x = x_ref[...].astype(jnp.float32)
            col = jax.lax.broadcasted_iota(jnp.int32, x.shape, 1) + n_idx * n_block
            x = jnp.where(col < n_size, x, 0.0)
            acc_ref[...] += jnp.sum(x, axis=-1, keepdims=True)
    else:
        acc_ref[...] += jnp.sum(x_ref[...].astype(jnp.float32), axis=-1,
                                keepdims=True)

    @pl.when(n_idx == last)
    def _finalize():
        o_ref[...] = (acc_ref[...] * inv_n).astype(o_ref.dtype)


def _avg_pool_last(x2, *, block_b=None, block_n=None):
    """Mean over the last axis of a (B, N) array via an in-kernel lane reduce."""
    bflat, n_size = x2.shape
    itemsize = jnp.dtype(x2.dtype).itemsize

    n_t = block_n if block_n is not None else (
        n_size if n_size <= _MAX_LANE_TILE else _MAX_LANE_TILE)

    if block_b is not None:
        b_t = block_b
    else:
        b_rows = max(8, _TARGET_INPUT_TILE_BYTES // (n_t * itemsize))
        b_cap = max(8, (_MAX_ACC_TILE_BYTES // (128 * 4)) // 8 * 8)
        b_rows = min(b_rows, b_cap)
        if bflat <= 8 or bflat <= b_rows:
            b_t = bflat
        else:
            b_t = max(8, (b_rows // 8) * 8)
        # v7x: give the single parallel (batch) axis >= 2 blocks when possible.
        if bflat > 8 and _cdiv(bflat, b_t) < 2:
            b_t = min(b_t, _round_up(_cdiv(bflat, 2), 8))

    grid = (_cdiv(bflat, b_t), _cdiv(n_size, n_t))
    mask_n = (n_size % n_t) != 0

    kernel = functools.partial(
        _avg_pool_last_kernel,
        inv_n=1.0 / n_size, n_size=n_size, n_block=n_t, mask_n=mask_n)

    in_tile = b_t * n_t * itemsize
    out_tile = b_t * 128 * itemsize      # lane-padded footprint
    acc_tile = b_t * 128 * 4
    total_bytes = x2.size * itemsize + bflat * itemsize

    out2 = pl.pallas_call(
        kernel,
        out_shape=jax.ShapeDtypeStruct((bflat, 1), x2.dtype),
        grid_spec=pltpu.PrefetchScalarGridSpec(
            num_scalar_prefetch=0,
            grid=grid,
            in_specs=[pl.BlockSpec((b_t, n_t), lambda b, n: (b, n))],
            out_specs=pl.BlockSpec((b_t, 1), lambda b, n: (b, 0)),
            scratch_shapes=[pltpu.VMEM((b_t, 1), jnp.float32)],
        ),
        compiler_params=pltpu.CompilerParams(
            dimension_semantics=("parallel", "arbitrary"),
            vmem_limit_bytes=_vmem_limit_bytes(in_tile, out_tile, acc_tile)),
        cost_estimate=pl.CostEstimate(
            flops=x2.size, transcendentals=0, bytes_accessed=total_bytes),
    )(x2)
    return out2[:, 0]


# --------------------------------------------------------------------------
# Public wrapper: torch.mean(x, dim=dim) equivalent.
# --------------------------------------------------------------------------
def average_pooling(x, dim, *, block_b=None, block_s=None, block_h=None,
                    block_n=None, min_pallas_elems=_MIN_PALLAS_ELEMS):
    """Pallas equivalent of torch.mean(x, dim=dim)."""
    x = jnp.asarray(x)
    dim = dim % x.ndim
    out_shape = x.shape[:dim] + x.shape[dim + 1:]

    # Small tensors: XLA's fused reduce hits roofline and can fuse with
    # neighbors; a separate pallas_call dispatch is strictly worse there.
    if x.ndim == 1 or x.size < min_pallas_elems:
        return jnp.mean(x, axis=dim)

    if dim == x.ndim - 1:
        # Reduce the lane axis inside the kernel (single HBM pass; no wrapper
        # transpose). The lane-sparse (B, 1) output is only B elements.
        bflat = math.prod(x.shape[:-1])
        x2 = x.reshape(bflat, x.shape[-1])          # free (adjacent merge)
        out1 = _avg_pool_last(x2, block_b=block_b, block_n=block_n)
        return out1.reshape(out_shape)

    n = x.shape[dim]
    bflat = math.prod(x.shape[:dim])
    h = math.prod(x.shape[dim + 1:])
    x3 = x.reshape(bflat, n, h)                     # free (adjacent merges)
    out2 = _avg_pool_3d(x3, block_b=block_b, block_s=block_s, block_h=block_h)
    return out2.reshape(out_shape)


if __name__ == "__main__":
    keys = jax.random.split(jax.random.PRNGKey(0), 5)

    def check(x, dim, out, atol=1e-5):
        ref = jnp.mean(x.astype(jnp.float32), axis=dim).astype(x.dtype)
        assert out.shape == ref.shape, (out.shape, ref.shape)
        assert out.dtype == x.dtype, (out.dtype, x.dtype)
        assert jnp.allclose(out.astype(jnp.float32), ref.astype(jnp.float32),
                            atol=atol, rtol=atol), (x.shape, dim)

    # 1) Typical NodeEmbedding usage: x = (batch, num_nodes, hidden), dim=1.
    #    Tiny, so force the Pallas path (default would fall back to jnp.mean).
    x1 = jax.random.normal(keys[0], (2, 8, 32), dtype=jnp.float32)
    o1 = jax.block_until_ready(average_pooling(x1, 1, min_pallas_elems=0))
    check(x1, 1, o1)

    # 2) Multi-tile grid: partial batch block (12 % 8), 3 hidden tiles, masked
    #    partial reduce tile (20 % 8), multi-step f32 accumulation.
    x2 = jax.random.normal(keys[1], (12, 20, 384), dtype=jnp.float32)
    o2 = jax.block_until_ready(
        average_pooling(x2, 1, block_b=8, block_s=8, block_h=128,
                        min_pallas_elems=0))
    check(x2, 1, o2)

    # 3) Reduce over the last axis: in-kernel lane reduce (no wrapper
    #    transpose), masked partial lane tile (160 % 128), 2 batch blocks.
    x3 = jax.random.normal(keys[2], (6, 7, 160), dtype=jnp.float32)
    o3 = jax.block_until_ready(
        average_pooling(x3, -1, block_n=128, min_pallas_elems=0))
    check(x3, -1, o3)

    # 4) bf16 input, f32 accumulation inside the kernel, masked reduce tail.
    x4 = jax.random.normal(keys[3], (16, 40, 256), dtype=jnp.bfloat16)
    o4 = jax.block_until_ready(
        average_pooling(x4, 1, block_b=8, block_s=16, block_h=128,
                        min_pallas_elems=0))
    check(x4, 1, o4, atol=2e-2)

    # 5) Reduce over dim 0 (leading-batch flattened to size 1, hidden split
    #    into two lane tiles by the v7x two-block heuristic).
    x5 = jax.random.normal(keys[4], (8, 4, 64), dtype=jnp.float32)
    o5 = jax.block_until_ready(average_pooling(x5, 0, min_pallas_elems=0))
    check(x5, 0, o5)

    print("KERNEL_OK")
</pallas_src>

<mosaic_0001>
module attributes {stable_mosaic.version = 11 : i64} {
  func.func @_avg_pool_kernel(%arg0: i32, %arg1: i32, %arg2: i32, %arg3: memref<2x8x32xf32, #tpu.memory_space<vmem>>, %arg4: memref<2x32xf32, #tpu.memory_space<vmem>>, %arg5: memref<2x32xf32, #tpu.memory_space<vmem>>) attributes {dimension_semantics = [#tpu.dimension_semantics<parallel>, #tpu.dimension_semantics<parallel>, #tpu.dimension_semantics<arbitrary>], iteration_bounds = array<i64: 1, 1, 1>, scalar_prefetch = 0 : i64, scratch_operands = 1 : i64, tpu.core_type = #tpu.core_type<tc>, window_params = [{transform_indices = @transform_0, window_bounds = array<i64: 2, 8, 32>}, {transform_indices = @transform_1, window_bounds = array<i64: 2, 32>}]} {
    %c0_i32 = arith.constant 0 : i32
    %0 = arith.cmpi eq, %arg2, %c0_i32 : i32
    %1 = arith.extui %0 : i1 to i32
    %c0_i32_0 = arith.constant 0 : i32
    %2 = arith.cmpi ne, %1, %c0_i32_0 : i32
    scf.if %2 {
      %cst_9 = arith.constant 0.000000e+00 : f32
      %11 = vector.broadcast %cst_9 : f32 to vector<2x32xf32>
      %c0_10 = arith.constant 0 : index
      %c0_11 = arith.constant 0 : index
      %12 = vector.load %arg5[%c0_10, %c0_11] : memref<2x32xf32, #tpu.memory_space<vmem>>, vector<2x32xf32>
      tpu.vector_store %arg5[%c0_10, %c0_11], %11 {strides = array<i32>} : memref<2x32xf32, #tpu.memory_space<vmem>>, vector<2x32xf32>,
    } else {
    }
    %c0 = arith.constant 0 : index
    %c0_1 = arith.constant 0 : index
    %3 = vector.load %arg5[%c0, %c0_1] : memref<2x32xf32, #tpu.memory_space<vmem>>, vector<2x32xf32>
    %c0_2 = arith.constant 0 : index
    %c0_3 = arith.constant 0 : index
    %c0_4 = arith.constant 0 : index
    %4 = vector.load %arg3[%c0_2, %c0_3, %c0_4] : memref<2x8x32xf32, #tpu.memory_space<vmem>>, vector<2x8x32xf32>
    %cst = arith.constant dense<0.000000e+00> : vector<2x32xf32>
    %5 = vector.multi_reduction <add>, %4, %cst [1] : vector<2x8x32xf32> to vector<2x32xf32>
    %6 = arith.addf %3, %5 : vector<2x32xf32>
    %c0_5 = arith.constant 0 : index
    %c0_6 = arith.constant 0 : index
    %7 = vector.load %arg5[%c0_5, %c0_6] : memref<2x32xf32, #tpu.memory_space<vmem>>, vector<2x32xf32>
    tpu.vector_store %arg5[%c0_5, %c0_6], %6 {strides = array<i32>} : memref<2x32xf32, #tpu.memory_space<vmem>>, vector<2x32xf32>,
    %c0_i32_7 = arith.constant 0 : i32
    %8 = arith.cmpi eq, %arg2, %c0_i32_7 : i32
    %9 = arith.extui %8 : i1 to i32
    %c0_i32_8 = arith.constant 0 : i32
    %10 = arith.cmpi ne, %9, %c0_i32_8 : i32
    scf.if %10 {
      %c0_9 = arith.constant 0 : index
      %c0_10 = arith.constant 0 : index
      %11 = vector.load %arg5[%c0_9, %c0_10] : memref<2x32xf32, #tpu.memory_space<vmem>>, vector<2x32xf32>
      %cst_11 = arith.constant 1.250000e-01 : f32
      %12 = vector.broadcast %cst_11 : f32 to vector<2x32xf32>
      %13 = arith.mulf %11, %12 : vector<2x32xf32>
      %c0_12 = arith.constant 0 : index
      %c0_13 = arith.constant 0 : index
      %14 = vector.load %arg4[%c0_12, %c0_13] : memref<2x32xf32, #tpu.memory_space<vmem>>, vector<2x32xf32>
      tpu.vector_store %arg4[%c0_12, %c0_13], %13 {strides = array<i32>} : memref<2x32xf32, #tpu.memory_space<vmem>>, vector<2x32xf32>,
    } else {
    }
    return
  }
  func.func @transform_0(%arg0: i32, %arg1: i32, %arg2: i32) -> (i32, i32, i32) {
    %c0_i32 = arith.constant 0 : i32
    return %arg0, %arg2, %arg1 : i32, i32, i32
  }
  func.func @transform_1(%arg0: i32, %arg1: i32, %arg2: i32) -> (i32, i32) {
    %c0_i32 = arith.constant 0 : i32
    return %arg0, %arg1 : i32, i32
  }
}

</mosaic_0001>

<bundles_post_ra>
// kernel: tpu_custom_call.1
= control target key start
LH: loop header
LB: loop body
LE: loop exit
PB: predicated region body
PF: predicated region fallthrough
CT: control target
= control target key end

     0   :  { %6 = vsyncpa [#allocation4], 0  ;;  %s171_s0 = inlined_call_operand.hbm [shape: f32[2,8,32], index: 0, kind: input, shape index: {}]   ;;  %s172_s1 = inlined_call_operand.hbm [shape: f32[2,32], index: 1, kind: output, shape index: {}]  }
   0x1   :  { %7 = vsyncpa [#allocation5], 0  ;;  %s129_s6 = smov [#allocation3]   ;;  %s81_s10 = scalar_lea.hbm %s171_s0, 256 }
   0x2   :  { %s13_s7 = sshll.u32 %s129_s6, 4  ;;  %p82_p0 = scmp.ne.s32.totalorder %s171_s0, %s81_s10  ;;  %s14_s7 = int_to_ptr.vmem [resolvable:$true] %s13_s7 }
   0x3   :  { %p85_p1 = scmp.lt.u32.totalorder %s81_s10, %s171_s0 }
   0x5   :  { %p87_p2 = pnand %p85_p1, %p82_p0 }
   0x7   :  { %90 = shalt.err (!%p87_p2)
}
   0x8   :  { %s91_s15 = scalar_lea.vmem %s14_s7, 256  ;;  %p96_p4 = scmp.lt.s32.totalorder %s14_s7, %s14_s7 }
   0x9   :  { %p92_p3 = scmp.ne.s32.totalorder %s14_s7, %s91_s15  ;;  %p97_p5 = scmp.lt.s32.totalorder %s91_s15, %s91_s15 }
   0xb   :  { %p98_p6 = por %p97_p5, %p96_p4 }
   0xd   :  { %p99_p7 = pnand %p98_p6, %p92_p3 }
   0xf   :  { %102 = shalt.err (!%p99_p7)
}
  0x10   :  { %s130_s16 = smov 128   ;;  %s131_s17 = smov 8  }
  0x11   :  { %19 = dma.hbm_to_vmem [thread:$0]  %s171_s0, 256, %s14_s7, [#allocation4], %s130_s16, %s130_s16, %s131_s17  }
  0x12   :  { %125 = dma.done.wait [#allocation4], 256  }
  0x13   :  { %126 = vsyncadd [#allocation4], 4294967040  ;;  %vm27_vm0 = vcmask 254976   ;;  %v132_v0 = vmov 0.0   ;;  %vm32_vm1 = vcmask 261120   ;;  %v30_v1 = vld [vmem:[#allocation3] sm:$0xff] }
  0x14   :  { %28 = vst.msk [vmem:[#allocation2] sm:$0x3] %vm27_vm0, %v132_v0  ;;  %v31_v2 = vld [vmem:[#allocation3 + $0x8] sm:$0xff]  ;;  %v33_v3 = vsel %vm32_vm1, %v30_v1, 0.0  ;;  %vm49_vm2 = vcmask 1041409   ;;  %s133_s0 = smov [#allocation6]  }
  0x15   :  { %v40_v4 = vsel %vm32_vm1, %v31_v2, 0.0  ;;  %v34_v5 = vrot.slane %v33_v3, 4  ;;  %s67_s20 = sshll.u32 %s133_s0, 4  ;;  %s68_s20 = int_to_ptr.vmem [resolvable:$true] %s67_s20 }
  0x16   :  { %v41_v6 = vrot.slane %v40_v4, 4  ;;  %s103_s21 = scalar_lea.vmem %s68_s20, 32  ;;  %p108_p9 = scmp.lt.s32.totalorder %s68_s20, %s68_s20 }
  0x17   :  { %v35_v7 = vadd.f32 %v34_v5, %v33_v3  ;;  %p104_p8 = scmp.ne.s32.totalorder %s68_s20, %s103_s21  ;;  %p109_p10 = scmp.lt.s32.totalorder %s103_s21, %s103_s21 }
  0x18   :  { %v42_v8 = vadd.f32 %v41_v6, %v40_v4 }
  0x19   :  { %v36_v9 = vrot.slane %v35_v7, 2  ;;  %p110_p11 = por %p109_p10, %p108_p9 }
  0x1a   :  { %v43_v10 = vrot.slane %v42_v8, 2 }
  0x1b   :  { %v37_v11 = vadd.f32 %v36_v9, %v35_v7  ;;  %v29_v15 = vld [vmem:[#allocation2] sm:$0x3]  ;;  %p111_p12 = pnand %p110_p11, %p104_p8 }
  0x1c   :  { %v44_v12 = vadd.f32 %v43_v10, %v42_v8 }
  0x1d   :  { %v38_v13 = vrot.slane %v37_v11, 1 }
  0x1e   :  { %v45_v14 = vrot.slane %v44_v12, 1 }
  0x1f   :  { %v39_v16 = vadd.f32 %v38_v13, %v37_v11 }
  0x20   :  { %v46_v17 = vadd.f32 %v45_v14, %v44_v12 }
  0x22   :  { %v50_v18 = vsel %vm49_vm2, %v46_v17, %v39_v16 }
  0x23   :  { %v52_v19 = vadd.f32 %v50_v18, %v29_v15 }
  0x25   :  { %54 = vst.msk [vmem:[#allocation2] sm:$0x3] %vm27_vm0, %v52_v19 }
  0x2c   :  { %v58_v20 = vld [vmem:[#allocation2] sm:$0x3] }
  0x2d   :  { %v59_v21 = vmul.f32 0.125, %v58_v20 }
  0x2f   :  { %60 = vst.msk [vmem:[#allocation6] sm:$0x3] %vm27_vm0, %v59_v21 }
  0x30   :  { %114 = shalt.err (!%p111_p12)
}
  0x31   :  { %s115_s24 = scalar_lea.hbm %s172_s1, 32 }
  0x32   :  { %p116_p13 = scmp.ne.s32.totalorder %s172_s1, %s115_s24  ;;  %p119_p0 = scmp.lt.u32.totalorder %s115_s24, %s172_s1 }
  0x34   :  { %p121_p1 = pnand %p119_p0, %p116_p13 }
  0x36   :  { %124 = shalt.err (!%p121_p1)
}
  0x37   :  { %70 = dma.vmem_to_hbm [thread:$0]  %s68_s20, 32, %s172_s1, [#allocation5]  }
  0x38   :  { %127 = dma.done.wait [#allocation5], 32  }
  0x39   :  { %128 = vsyncadd [#allocation5], 4294967264 }
  0x3a   :  { %74 = vsyncpa [#allocation4], 1 }
  0x3b   :  { %75 = vsyncpa [#allocation5], 1 }

</bundles_post_ra>
